<compile_context>
chip_gen: v6e
topology: v6e:2x2x1
jax: 0.10.0
libtpu: 0.0.40
codegen_flags: <defaults>
</compile_context>

<pallas_src>
import functools

import jax
import jax.numpy as jnp
from jax import lax
from jax.experimental import pallas as pl
from jax.experimental.pallas import tpu as pltpu


# ------------------------------- Pallas kernel --------------------------------

def _conv3x3_s2_bn_kernel(x_ref, w_ref, s_ref, b_ref, o_ref, *,
                          t_rows, ws, wo, apply_gelu):
    """conv3x3/stride2/pad1 + folded BN (+GELU) for one (batch, row-tile) block.

    x_ref: (t_rows*ws, 8*Cin) bf16  flattened paired space-to-depth rows
    w_ref: (2, 8*Cin, Cout)   bf16  repacked conv weight (dX=0 / dX=1 taps)
    s_ref: (1, Cout)          f32   folded BN (+post_affine) scale
    b_ref: (1, Cout)          f32   folded BN (+post_affine) bias
    o_ref: (t_rows, wo, Cout)       output tile (bf16 intermediate / f32 final)
    """
    xm = x_ref[...]                                     # one big bf16 load

    # Two accumulating MXU matmuls per tile: M = t_rows*ws, K = 8*Cin.
    left = jnp.dot(xm, w_ref[0], preferred_element_type=jnp.float32)
    right = jnp.dot(xm, w_ref[1], preferred_element_type=jnp.float32)

    # dX=1 taps read the *next* space-to-depth column -> shift-add on the
    # matmul result (one sublane shift for the whole tile, never stored to HBM).
    acc = left[:-1] + right[1:]                         # (t_rows*ws - 1, Cout)

    out = acc * s_ref[...] + b_ref[...]                 # fused eval-mode BN, f32
    if apply_gelu:
        # tanh-approx GELU (EUP slot); PyTorch nn.GELU() is exact erf.
        # TODO(synk): restore exact-erf GELU if bit-faithful GELU is required.
        c0 = 0.7978845608028654                         # sqrt(2/pi)
        c1 = 0.044715
        out = 0.5 * out * (1.0 + jnp.tanh(c0 * (out + c1 * out * out * out)))
    out = out.astype(o_ref.dtype)

    # Static, fully-unrolled store loop: row r of the tile lives at flattened
    # positions [r*ws, r*ws + wo) (the last column per row is padding / unused).
    for r in range(t_rows):
        o_ref[r] = out[r * ws: r * ws + wo]


# --------------------------------- wrapper -------------------------------------

def _pick_row_tile(ho, ws, target=16):
    """Output rows per grid step: divides `ho`, and (t*ws) % 8 == 0 so the
    flattened input block obeys the (8,128) block-shape constraint."""
    if ho <= 2 * target:
        return ho                       # whole image in H (block == full dim)
    for t in range(target, 1, -1):
        if ho % t == 0 and (t * ws) % 8 == 0:
            return t
    return ho                           # fallback: full dim (always legal)


def conv3x3_s2_bn(x_flat, ho, ws, w2, scale, bias, apply_gelu, out_dtype):
    """x_flat: (B, ho*ws, 8*Cin) bf16  ->  (B, ho, wo, Cout) NHWC."""
    B, hw, k8 = x_flat.shape
    assert hw == ho * ws
    wo = ws - 1
    cout = w2.shape[-1]
    t = _pick_row_tile(ho, ws)
    kern = functools.partial(_conv3x3_s2_bn_kernel, t_rows=t, ws=ws, wo=wo,
                             apply_gelu=apply_gelu)
    return pl.pallas_call(
        kern,
        out_shape=jax.ShapeDtypeStruct((B, ho, wo, cout), out_dtype),
        grid_spec=pltpu.PrefetchScalarGridSpec(
            num_scalar_prefetch=0,
            grid=(B, ho // t),
            in_specs=[
                # One row-tile of one image per grid step (batch dim squeezed).
                pl.BlockSpec((None, t * ws, k8), lambda b, i: (b, i, 0)),
                # Constant block index => fetched once across the whole grid.
                # TODO(synk): pipeline_mode=pl.Buffered(1) here on v7x to avoid
                # double-buffering the (never-changing) weight block.
                pl.BlockSpec((2, k8, cout), lambda b, i: (0, 0, 0)),
                pl.BlockSpec((1, cout), lambda b, i: (0, 0)),
                pl.BlockSpec((1, cout), lambda b, i: (0, 0)),
            ],
            out_specs=pl.BlockSpec((None, t, wo, cout),
                                   lambda b, i: (b, i, 0, 0)),
        ),
        compiler_params=pltpu.CompilerParams(
            dimension_semantics=("parallel", "parallel"),
            vmem_limit_bytes=48 * 1024 * 1024),
    )(x_flat, w2, scale, bias)


# ------------------------ host-side layout preparation -------------------------

def _paired_s2d(xs):
    """(B, Hs, Ws, 4C) space-to-depth -> flattened row pairs (B, Ho*Ws, 8C)."""
    B, hs, ws, c4 = xs.shape
    ho = hs - 1
    xcat = jnp.concatenate([xs[:, :-1], xs[:, 1:]], axis=-1)   # (B, Ho, Ws, 8C)
    return xcat.reshape(B, ho * ws, 2 * c4), ho, ws


def _prep_from_nchw_with_affine(x_nchw, alpha, beta):
    """pre_affine + zero-pad(1) + 2x2 space-to-depth + row pairing, from NCHW.
    Matches PyTorch exactly (affine first, then zero padding); stored bf16."""
    B, C, H, W = x_nchw.shape
    assert H % 2 == 0 and W % 2 == 0, "spatial dims must be even at every stage"
    xa = (x_nchw * alpha + beta).astype(jnp.bfloat16)
    xp = jnp.pad(xa, ((0, 0), (0, 0), (1, 1), (1, 1)))
    hs, ws = (H + 2) // 2, (W + 2) // 2
    xs = xp.reshape(B, C, hs, 2, ws, 2).transpose(0, 2, 4, 3, 5, 1)
    xs = xs.reshape(B, hs, ws, 4 * C)
    return _paired_s2d(xs)


def _prep_from_nhwc(x_nhwc):
    """zero-pad(1) + 2x2 space-to-depth + row pairing for intermediate (bf16)
    NHWC activations."""
    B, H, W, C = x_nhwc.shape
    assert H % 2 == 0 and W % 2 == 0, "spatial dims must be even at every stage"
    xp = jnp.pad(x_nhwc, ((0, 0), (1, 1), (1, 1), (0, 0)))
    hs, ws = (H + 2) // 2, (W + 2) // 2
    xs = xp.reshape(B, hs, 2, ws, 2, C).transpose(0, 1, 3, 2, 4, 5)
    xs = xs.reshape(B, hs, ws, 4 * C)
    return _paired_s2d(xs)


def _pack_conv3x3_weight(w_oihw, dtype=jnp.bfloat16):
    """(Cout, Cin, 3, 3) -> (2, 8*Cin, Cout) matching the paired-s2d layout.

    Leading index dX in {0,1}: dX=0 uses kw in {0,1}, dX=1 uses kw=2 (read from
    the next s2d column).  Contraction index = dY*4*Cin + sr*2*Cin + sc*Cin + c,
    with kh = 2*dY + sr (kh=3 taps are zero) and kw = 2*dX + sc (kw=3 zero)."""
    cout, cin = w_oihw.shape[:2]
    w = jnp.transpose(w_oihw, (2, 3, 1, 0))              # (kh, kw, Cin, Cout)
    w2 = jnp.zeros((2, 2, 2, 2, cin, cout), w.dtype)      # (dX, dY, sr, sc, ...)
    for kh in range(3):
        for kw in range(3):
            w2 = w2.at[kw // 2, kh // 2, kh % 2, kw % 2].set(w[kh, kw])
    return w2.reshape(2, 8 * cin, cout).astype(dtype)


# ------------------------------ parameter setup --------------------------------

def _stage_dims(in_chans, embed_dim, patch_size):
    if patch_size == 16:
        return [in_chans, embed_dim // 8, embed_dim // 4, embed_dim // 2,
                embed_dim]
    if patch_size == 4:
        return [in_chans, embed_dim // 2, embed_dim]
    if patch_size == 2:
        return [in_chans, embed_dim]
    raise ValueError("patch size has to be in [2, 4, 16]")


def _gelu_flags(n_stages):
    # GELU between stages; for the single-stage (patch_size==2) case the GELU
    # follows the only conv (matches the PyTorch Sequential).
    return [True] * (n_stages - 1) + [n_stages == 1]


def init_conv_patch_embed_params(key, in_chans, embed_dim, patch_size):
    dims = _stage_dims(in_chans, embed_dim, patch_size)
    gelus = _gelu_flags(len(dims) - 1)
    eps = 1e-5
    n_stages = len(dims) - 1
    keys = jax.random.split(key, n_stages + 1)

    raw_stages, packed_stages = [], []
    for i, (cin, cout) in enumerate(zip(dims[:-1], dims[1:])):
        kw_, kg, kb, km, kv = jax.random.split(keys[i], 5)
        w = 0.1 * jax.random.normal(kw_, (cout, cin, 3, 3), jnp.float32)
        gamma = 1.0 + 0.1 * jax.random.normal(kg, (cout,), jnp.float32)
        beta = 0.1 * jax.random.normal(kb, (cout,), jnp.float32)
        running_mean = 0.1 * jax.random.normal(km, (cout,), jnp.float32)
        running_var = 0.5 + jax.random.uniform(kv, (cout,), jnp.float32)
        scale = gamma / jnp.sqrt(running_var + eps)      # eval-mode BN fold
        bias = beta - running_mean * scale
        raw_stages.append(dict(w=w, scale=scale, bias=bias, gelu=gelus[i]))
        packed_stages.append(dict(w2=_pack_conv3x3_weight(w),
                                  scale=scale, bias=bias))

    ka1, kb1, ka2, kb2 = jax.random.split(keys[-1], 4)
    pre_alpha = 1.0 + 0.1 * jax.random.normal(ka1, (1, in_chans, 1, 1),
                                              jnp.float32)
    pre_beta = 0.1 * jax.random.normal(kb1, (1, in_chans, 1, 1), jnp.float32)
    post_alpha = 1.0 + 0.1 * jax.random.normal(ka2, (embed_dim,), jnp.float32)
    post_beta = 0.1 * jax.random.normal(kb2, (embed_dim,), jnp.float32)

    # Fold post_affine into the last stage's BN scale/bias (exact algebra).
    last = packed_stages[-1]
    packed_stages[-1] = dict(w2=last["w2"],
                             scale=last["scale"] * post_alpha,
                             bias=last["bias"] * post_alpha + post_beta)

    packed = dict(
        pre_alpha=pre_alpha, pre_beta=pre_beta,
        stages=[dict(w2=s["w2"],
                     scale=s["scale"].reshape(1, -1),
                     bias=s["bias"].reshape(1, -1)) for s in packed_stages],
    )
    raw = dict(
        pre_alpha=pre_alpha, pre_beta=pre_beta,
        post_alpha=post_alpha.reshape(1, -1, 1, 1),
        post_beta=post_beta.reshape(1, -1, 1, 1),
        stages=raw_stages,
    )
    return dict(packed=packed, raw=raw)


# --------------------------------- forward --------------------------------------

def conv_patch_embed_forward(x_nchw, packed):
    """Matches ConvPatchEmbed.forward: NCHW in, NCHW out (eval-mode BN)."""
    stages = packed["stages"]
    n = len(stages)
    gelus = _gelu_flags(n)

    x = None
    for i, st in enumerate(stages):
        if i == 0:
            xf, ho, ws = _prep_from_nchw_with_affine(
                x_nchw, packed["pre_alpha"], packed["pre_beta"])
        else:
            xf, ho, ws = _prep_from_nhwc(x)
        out_dtype = jnp.float32 if i == n - 1 else jnp.bfloat16
        x = conv3x3_s2_bn(xf, ho, ws, st["w2"], st["scale"], st["bias"],
                          gelus[i], out_dtype)

    # post_affine already folded into the last stage's scale/bias.
    # NHWC -> NCHW only on the small final feature map.
    return jnp.transpose(x, (0, 3, 1, 2))


# ----------------------------- pure-JAX reference -------------------------------

def conv_patch_embed_reference(x_nchw, raw):
    """Op-for-op reference of the PyTorch module (eval-mode BN, exact GELU)."""
    x = x_nchw * raw["pre_alpha"] + raw["pre_beta"]
    for st in raw["stages"]:
        x = lax.conv_general_dilated(
            x, st["w"], window_strides=(2, 2), padding=((1, 1), (1, 1)),
            dimension_numbers=("NCHW", "OIHW", "NCHW"))
        x = x * st["scale"].reshape(1, -1, 1, 1) + st["bias"].reshape(1, -1, 1, 1)
        if st["gelu"]:
            x = jax.nn.gelu(x, approximate=False)
    return x * raw["post_alpha"] + raw["post_beta"]


# ----------------------------------- main ---------------------------------------

if __name__ == "__main__":
    key = jax.random.PRNGKey(0)
    k_x, k_p = jax.random.split(key)

    # Small demo shapes: img_size=16, patch_size=4, in_chans=4, embed_dim=32.
    B, C, H, W = 2, 4, 16, 16
    embed_dim, patch_size = 32, 4

    x = jax.random.normal(k_x, (B, C, H, W), jnp.float32)
    params = init_conv_patch_embed_params(k_p, C, embed_dim, patch_size)

    fwd = jax.jit(conv_patch_embed_forward)
    out = jax.block_until_ready(fwd(x, params["packed"]))

    expected = (B, embed_dim, H // patch_size, W // patch_size)
    assert out.shape == expected, (out.shape, expected)
    assert out.dtype == jnp.float32
    assert bool(jnp.all(jnp.isfinite(out)))

    # Numerics cross-check vs. a pure-JAX reference of the PyTorch module.
    # Tolerance accounts for bf16 matmul operands + bf16 intermediate
    # activations + tanh-GELU approximation (f32 epilogue/accumulation).
    ref = conv_patch_embed_reference(x, params["raw"])
    max_err = float(jnp.max(jnp.abs(out - ref)))
    assert bool(jnp.allclose(out, ref, atol=7.5e-2, rtol=7.5e-2)), max_err

    print("KERNEL_OK")
</pallas_src>

<mosaic_0001>
module attributes {stable_mosaic.version = 11 : i64} {
  func.func @_conv3x3_s2_bn_kernel(%arg0: i32, %arg1: i32, %arg2: memref<1x72x32xbf16, #tpu.memory_space<vmem>>, %arg3: memref<2x32x16xbf16, #tpu.memory_space<vmem>>, %arg4: memref<1x16xf32, #tpu.memory_space<vmem>>, %arg5: memref<1x16xf32, #tpu.memory_space<vmem>>, %arg6: memref<1x8x8x16xbf16, #tpu.memory_space<vmem>>) attributes {dimension_semantics = [#tpu.dimension_semantics<parallel>, #tpu.dimension_semantics<parallel>], iteration_bounds = array<i64: 2, 1>, scalar_prefetch = 0 : i64, scratch_operands = 0 : i64, tpu.core_type = #tpu.core_type<tc>, window_params = [{transform_indices = @transform_0, window_bounds = array<i64: 1, 72, 32>}, {pipeline_mode = #tpu.pipeline_mode<synchronous>, transform_indices = @transform_1, window_bounds = array<i64: 2, 32, 16>}, {pipeline_mode = #tpu.pipeline_mode<synchronous>, transform_indices = @transform_2, window_bounds = array<i64: 1, 16>}, {pipeline_mode = #tpu.pipeline_mode<synchronous>, transform_indices = @transform_3, window_bounds = array<i64: 1, 16>}, {transform_indices = @transform_4, window_bounds = array<i64: 1, 8, 8, 16>}]} {
    %c0 = arith.constant 0 : index
    %c0_0 = arith.constant 0 : index
    %c0_1 = arith.constant 0 : index
    %0 = vector.load %arg2[%c0, %c0_0, %c0_1] : memref<1x72x32xbf16, #tpu.memory_space<vmem>>, vector<1x72x32xbf16>
    %1 = vector.shape_cast %0 : vector<1x72x32xbf16> to vector<72x32xbf16>
    %c0_2 = arith.constant 0 : index
    %c0_3 = arith.constant 0 : index
    %c0_4 = arith.constant 0 : index
    %2 = vector.load %arg3[%c0_2, %c0_3, %c0_4] : memref<2x32x16xbf16, #tpu.memory_space<vmem>>, vector<1x32x16xbf16>
    %3 = vector.shape_cast %2 : vector<1x32x16xbf16> to vector<32x16xbf16>
    %cst = arith.constant dense<0.000000e+00> : vector<72x16xf32>
    %4 = tpu.matmul %1, %3, %cst {dimension_numbers = #tpu.dot_dimension_numbers<[1], [0], [0], [1], [0, 0, 1, 1], [], []>} : vector<72x32xbf16>, vector<32x16xbf16>, vector<72x16xf32> -> vector<72x16xf32>
    %c1 = arith.constant 1 : index
    %c0_5 = arith.constant 0 : index
    %c0_6 = arith.constant 0 : index
    %5 = vector.load %arg3[%c1, %c0_5, %c0_6] : memref<2x32x16xbf16, #tpu.memory_space<vmem>>, vector<1x32x16xbf16>
    %6 = vector.shape_cast %5 : vector<1x32x16xbf16> to vector<32x16xbf16>
    %cst_7 = arith.constant dense<0.000000e+00> : vector<72x16xf32>
    %7 = tpu.matmul %1, %6, %cst_7 {dimension_numbers = #tpu.dot_dimension_numbers<[1], [0], [0], [1], [0, 0, 1, 1], [], []>} : vector<72x32xbf16>, vector<32x16xbf16>, vector<72x16xf32> -> vector<72x16xf32>
    %8 = vector.extract_strided_slice %4 {offsets = [0, 0], sizes = [71, 16], strides = [1, 1]} : vector<72x16xf32> to vector<71x16xf32>
    %9 = vector.extract_strided_slice %7 {offsets = [1, 0], sizes = [71, 16], strides = [1, 1]} : vector<72x16xf32> to vector<71x16xf32>
    %10 = arith.addf %8, %9 : vector<71x16xf32>
    %c0_8 = arith.constant 0 : index
    %c0_9 = arith.constant 0 : index
    %11 = vector.load %arg4[%c0_8, %c0_9] : memref<1x16xf32, #tpu.memory_space<vmem>>, vector<1x16xf32>
    %12 = vector.broadcast %11 : vector<1x16xf32> to vector<71x16xf32>
    %13 = arith.mulf %10, %12 : vector<71x16xf32>
    %c0_10 = arith.constant 0 : index
    %c0_11 = arith.constant 0 : index
    %14 = vector.load %arg5[%c0_10, %c0_11] : memref<1x16xf32, #tpu.memory_space<vmem>>, vector<1x16xf32>
    %15 = vector.broadcast %14 : vector<1x16xf32> to vector<71x16xf32>
    %16 = arith.addf %13, %15 : vector<71x16xf32>
    %cst_12 = arith.constant 5.000000e-01 : f32
    %17 = vector.broadcast %cst_12 : f32 to vector<71x16xf32>
    %18 = arith.mulf %17, %16 : vector<71x16xf32>
    %cst_13 = arith.constant 4.471500e-02 : f32
    %19 = vector.broadcast %cst_13 : f32 to vector<71x16xf32>
    %20 = arith.mulf %19, %16 : vector<71x16xf32>
    %21 = arith.mulf %20, %16 : vector<71x16xf32>
    %22 = arith.mulf %21, %16 : vector<71x16xf32>
    %23 = arith.addf %16, %22 : vector<71x16xf32>
    %cst_14 = arith.constant 0.797884583 : f32
    %24 = vector.broadcast %cst_14 : f32 to vector<71x16xf32>
    %25 = arith.mulf %24, %23 : vector<71x16xf32>
    %26 = math.tanh %25 : vector<71x16xf32>
    %cst_15 = arith.constant 1.000000e+00 : f32
    %27 = vector.broadcast %cst_15 : f32 to vector<71x16xf32>
    %28 = arith.addf %27, %26 : vector<71x16xf32>
    %29 = arith.mulf %18, %28 : vector<71x16xf32>
    %30 = arith.truncf %29 : vector<71x16xf32> to vector<71x16xbf16>
    %31 = vector.extract_strided_slice %30 {offsets = [0, 0], sizes = [8, 16], strides = [1, 1]} : vector<71x16xbf16> to vector<8x16xbf16>
    %c0_16 = arith.constant 0 : index
    %c0_17 = arith.constant 0 : index
    %c0_18 = arith.constant 0 : index
    %c0_19 = arith.constant 0 : index
    %32 = vector.load %arg6[%c0_16, %c0_17, %c0_18, %c0_19] : memref<1x8x8x16xbf16, #tpu.memory_space<vmem>>, vector<1x1x8x16xbf16>
    %33 = vector.shape_cast %32 : vector<1x1x8x16xbf16> to vector<8x16xbf16>
    %34 = vector.shape_cast %31 : vector<8x16xbf16> to vector<1x1x8x16xbf16>
    tpu.vector_store %arg6[%c0_16, %c0_17, %c0_18, %c0_19], %34 {strides = array<i32>} : memref<1x8x8x16xbf16, #tpu.memory_space<vmem>>, vector<1x1x8x16xbf16>,
    %35 = vector.extract_strided_slice %30 {offsets = [9, 0], sizes = [8, 16], strides = [1, 1]} : vector<71x16xbf16> to vector<8x16xbf16>
    %c0_20 = arith.constant 0 : index
    %c1_21 = arith.constant 1 : index
    %c0_22 = arith.constant 0 : index
    %c0_23 = arith.constant 0 : index
    %36 = vector.load %arg6[%c0_20, %c1_21, %c0_22, %c0_23] : memref<1x8x8x16xbf16, #tpu.memory_space<vmem>>, vector<1x1x8x16xbf16>
    %37 = vector.shape_cast %36 : vector<1x1x8x16xbf16> to vector<8x16xbf16>
    %38 = vector.shape_cast %35 : vector<8x16xbf16> to vector<1x1x8x16xbf16>
    tpu.vector_store %arg6[%c0_20, %c1_21, %c0_22, %c0_23], %38 {strides = array<i32>} : memref<1x8x8x16xbf16, #tpu.memory_space<vmem>>, vector<1x1x8x16xbf16>,
    %39 = vector.extract_strided_slice %30 {offsets = [18, 0], sizes = [8, 16], strides = [1, 1]} : vector<71x16xbf16> to vector<8x16xbf16>
    %c0_24 = arith.constant 0 : index
    %c2 = arith.constant 2 : index
    %c0_25 = arith.constant 0 : index
    %c0_26 = arith.constant 0 : index
    %40 = vector.load %arg6[%c0_24, %c2, %c0_25, %c0_26] : memref<1x8x8x16xbf16, #tpu.memory_space<vmem>>, vector<1x1x8x16xbf16>
    %41 = vector.shape_cast %40 : vector<1x1x8x16xbf16> to vector<8x16xbf16>
    %42 = vector.shape_cast %39 : vector<8x16xbf16> to vector<1x1x8x16xbf16>
    tpu.vector_store %arg6[%c0_24, %c2, %c0_25, %c0_26], %42 {strides = array<i32>} : memref<1x8x8x16xbf16, #tpu.memory_space<vmem>>, vector<1x1x8x16xbf16>,
    %43 = vector.extract_strided_slice %30 {offsets = [27, 0], sizes = [8, 16], strides = [1, 1]} : vector<71x16xbf16> to vector<8x16xbf16>
    %c0_27 = arith.constant 0 : index
    %c3 = arith.constant 3 : index
    %c0_28 = arith.constant 0 : index
    %c0_29 = arith.constant 0 : index
    %44 = vector.load %arg6[%c0_27, %c3, %c0_28, %c0_29] : memref<1x8x8x16xbf16, #tpu.memory_space<vmem>>, vector<1x1x8x16xbf16>
    %45 = vector.shape_cast %44 : vector<1x1x8x16xbf16> to vector<8x16xbf16>
    %46 = vector.shape_cast %43 : vector<8x16xbf16> to vector<1x1x8x16xbf16>
    tpu.vector_store %arg6[%c0_27, %c3, %c0_28, %c0_29], %46 {strides = array<i32>} : memref<1x8x8x16xbf16, #tpu.memory_space<vmem>>, vector<1x1x8x16xbf16>,
    %47 = vector.extract_strided_slice %30 {offsets = [36, 0], sizes = [8, 16], strides = [1, 1]} : vector<71x16xbf16> to vector<8x16xbf16>
    %c0_30 = arith.constant 0 : index
    %c4 = arith.constant 4 : index
    %c0_31 = arith.constant 0 : index
    %c0_32 = arith.constant 0 : index
    %48 = vector.load %arg6[%c0_30, %c4, %c0_31, %c0_32] : memref<1x8x8x16xbf16, #tpu.memory_space<vmem>>, vector<1x1x8x16xbf16>
    %49 = vector.shape_cast %48 : vector<1x1x8x16xbf16> to vector<8x16xbf16>
    %50 = vector.shape_cast %47 : vector<8x16xbf16> to vector<1x1x8x16xbf16>
    tpu.vector_store %arg6[%c0_30, %c4, %c0_31, %c0_32], %50 {strides = array<i32>} : memref<1x8x8x16xbf16, #tpu.memory_space<vmem>>, vector<1x1x8x16xbf16>,
    %51 = vector.extract_strided_slice %30 {offsets = [45, 0], sizes = [8, 16], strides = [1, 1]} : vector<71x16xbf16> to vector<8x16xbf16>
    %c0_33 = arith.constant 0 : index
    %c5 = arith.constant 5 : index
    %c0_34 = arith.constant 0 : index
    %c0_35 = arith.constant 0 : index
    %52 = vector.load %arg6[%c0_33, %c5, %c0_34, %c0_35] : memref<1x8x8x16xbf16, #tpu.memory_space<vmem>>, vector<1x1x8x16xbf16>
    %53 = vector.shape_cast %52 : vector<1x1x8x16xbf16> to vector<8x16xbf16>
    %54 = vector.shape_cast %51 : vector<8x16xbf16> to vector<1x1x8x16xbf16>
    tpu.vector_store %arg6[%c0_33, %c5, %c0_34, %c0_35], %54 {strides = array<i32>} : memref<1x8x8x16xbf16, #tpu.memory_space<vmem>>, vector<1x1x8x16xbf16>,
    %55 = vector.extract_strided_slice %30 {offsets = [54, 0], sizes = [8, 16], strides = [1, 1]} : vector<71x16xbf16> to vector<8x16xbf16>
    %c0_36 = arith.constant 0 : index
    %c6 = arith.constant 6 : index
    %c0_37 = arith.constant 0 : index
    %c0_38 = arith.constant 0 : index
    %56 = vector.load %arg6[%c0_36, %c6, %c0_37, %c0_38] : memref<1x8x8x16xbf16, #tpu.memory_space<vmem>>, vector<1x1x8x16xbf16>
    %57 = vector.shape_cast %56 : vector<1x1x8x16xbf16> to vector<8x16xbf16>
    %58 = vector.shape_cast %55 : vector<8x16xbf16> to vector<1x1x8x16xbf16>
    tpu.vector_store %arg6[%c0_36, %c6, %c0_37, %c0_38], %58 {strides = array<i32>} : memref<1x8x8x16xbf16, #tpu.memory_space<vmem>>, vector<1x1x8x16xbf16>,
    %59 = vector.extract_strided_slice %30 {offsets = [63, 0], sizes = [8, 16], strides = [1, 1]} : vector<71x16xbf16> to vector<8x16xbf16>
    %c0_39 = arith.constant 0 : index
    %c7 = arith.constant 7 : index
    %c0_40 = arith.constant 0 : index
    %c0_41 = arith.constant 0 : index
    %60 = vector.load %arg6[%c0_39, %c7, %c0_40, %c0_41] : memref<1x8x8x16xbf16, #tpu.memory_space<vmem>>, vector<1x1x8x16xbf16>
    %61 = vector.shape_cast %60 : vector<1x1x8x16xbf16> to vector<8x16xbf16>
    %62 = vector.shape_cast %59 : vector<8x16xbf16> to vector<1x1x8x16xbf16>
    tpu.vector_store %arg6[%c0_39, %c7, %c0_40, %c0_41], %62 {strides = array<i32>} : memref<1x8x8x16xbf16, #tpu.memory_space<vmem>>, vector<1x1x8x16xbf16>,
    return
  }
  func.func @transform_0(%arg0: i32, %arg1: i32) -> (i32, i32, i32) {
    %c0_i32 = arith.constant 0 : i32
    %c0_i32_0 = arith.constant 0 : i32
    return %arg0, %arg1, %c0_i32 : i32, i32, i32
  }
  func.func @transform_1(%arg0: i32, %arg1: i32) -> (i32, i32, i32) {
    %c0_i32 = arith.constant 0 : i32
    %c0_i32_0 = arith.constant 0 : i32
    %c0_i32_1 = arith.constant 0 : i32
    %c0_i32_2 = arith.constant 0 : i32
    return %c0_i32, %c0_i32_0, %c0_i32_1 : i32, i32, i32
  }
  func.func @transform_2(%arg0: i32, %arg1: i32) -> (i32, i32) {
    %c0_i32 = arith.constant 0 : i32
    %c0_i32_0 = arith.constant 0 : i32
    %c0_i32_1 = arith.constant 0 : i32
    return %c0_i32, %c0_i32_0 : i32, i32
  }
  func.func @transform_3(%arg0: i32, %arg1: i32) -> (i32, i32) {
    %c0_i32 = arith.constant 0 : i32
    %c0_i32_0 = arith.constant 0 : i32
    %c0_i32_1 = arith.constant 0 : i32
    return %c0_i32, %c0_i32_0 : i32, i32
  }
  func.func @transform_4(%arg0: i32, %arg1: i32) -> (i32, i32, i32, i32) {
    %c0_i32 = arith.constant 0 : i32
    %c0_i32_0 = arith.constant 0 : i32
    %c0_i32_1 = arith.constant 0 : i32
    return %arg0, %arg1, %c0_i32, %c0_i32_0 : i32, i32, i32, i32
  }
}

module attributes {stable_mosaic.version = 11 : i64} {
  func.func @_conv3x3_s2_bn_kernel(%arg0: i32, %arg1: i32, %arg2: memref<1x20x128xbf16, #tpu.memory_space<vmem>>, %arg3: memref<2x128x32xbf16, #tpu.memory_space<vmem>>, %arg4: memref<1x32xf32, #tpu.memory_space<vmem>>, %arg5: memref<1x32xf32, #tpu.memory_space<vmem>>, %arg6: memref<1x4x4x32xf32, #tpu.memory_space<vmem>>) attributes {dimension_semantics = [#tpu.dimension_semantics<parallel>, #tpu.dimension_semantics<parallel>], iteration_bounds = array<i64: 2, 1>, scalar_prefetch = 0 : i64, scratch_operands = 0 : i64, tpu.core_type = #tpu.core_type<tc>, window_params = [{transform_indices = @transform_0, window_bounds = array<i64: 1, 20, 128>}, {pipeline_mode = #tpu.pipeline_mode<synchronous>, transform_indices = @transform_1, window_bounds = array<i64: 2, 128, 32>}, {pipeline_mode = #tpu.pipeline_mode<synchronous>, transform_indices = @transform_2, window_bounds = array<i64: 1, 32>}, {pipeline_mode = #tpu.pipeline_mode<synchronous>, transform_indices = @transform_3, window_bounds = array<i64: 1, 32>}, {transform_indices = @transform_4, window_bounds = array<i64: 1, 4, 4, 32>}]} {
    %c0 = arith.constant 0 : index
    %c0_0 = arith.constant 0 : index
    %c0_1 = arith.constant 0 : index
    %0 = vector.load %arg2[%c0, %c0_0, %c0_1] : memref<1x20x128xbf16, #tpu.memory_space<vmem>>, vector<1x20x128xbf16>
    %1 = vector.shape_cast %0 : vector<1x20x128xbf16> to vector<20x128xbf16>
    %c0_2 = arith.constant 0 : index
    %c0_3 = arith.constant 0 : index
    %c0_4 = arith.constant 0 : index
    %2 = vector.load %arg3[%c0_2, %c0_3, %c0_4] : memref<2x128x32xbf16, #tpu.memory_space<vmem>>, vector<1x128x32xbf16>
    %3 = vector.shape_cast %2 : vector<1x128x32xbf16> to vector<128x32xbf16>
    %cst = arith.constant dense<0.000000e+00> : vector<20x32xf32>
    %4 = tpu.matmul %1, %3, %cst {dimension_numbers = #tpu.dot_dimension_numbers<[1], [0], [0], [1], [0, 0, 1, 1], [], []>} : vector<20x128xbf16>, vector<128x32xbf16>, vector<20x32xf32> -> vector<20x32xf32>
    %c1 = arith.constant 1 : index
    %c0_5 = arith.constant 0 : index
    %c0_6 = arith.constant 0 : index
    %5 = vector.load %arg3[%c1, %c0_5, %c0_6] : memref<2x128x32xbf16, #tpu.memory_space<vmem>>, vector<1x128x32xbf16>
    %6 = vector.shape_cast %5 : vector<1x128x32xbf16> to vector<128x32xbf16>
    %cst_7 = arith.constant dense<0.000000e+00> : vector<20x32xf32>
    %7 = tpu.matmul %1, %6, %cst_7 {dimension_numbers = #tpu.dot_dimension_numbers<[1], [0], [0], [1], [0, 0, 1, 1], [], []>} : vector<20x128xbf16>, vector<128x32xbf16>, vector<20x32xf32> -> vector<20x32xf32>
    %8 = vector.extract_strided_slice %4 {offsets = [0, 0], sizes = [19, 32], strides = [1, 1]} : vector<20x32xf32> to vector<19x32xf32>
    %9 = vector.extract_strided_slice %7 {offsets = [1, 0], sizes = [19, 32], strides = [1, 1]} : vector<20x32xf32> to vector<19x32xf32>
    %10 = arith.addf %8, %9 : vector<19x32xf32>
    %c0_8 = arith.constant 0 : index
    %c0_9 = arith.constant 0 : index
    %11 = vector.load %arg4[%c0_8, %c0_9] : memref<1x32xf32, #tpu.memory_space<vmem>>, vector<1x32xf32>
    %12 = vector.broadcast %11 : vector<1x32xf32> to vector<19x32xf32>
    %13 = arith.mulf %10, %12 : vector<19x32xf32>
    %c0_10 = arith.constant 0 : index
    %c0_11 = arith.constant 0 : index
    %14 = vector.load %arg5[%c0_10, %c0_11] : memref<1x32xf32, #tpu.memory_space<vmem>>, vector<1x32xf32>
    %15 = vector.broadcast %14 : vector<1x32xf32> to vector<19x32xf32>
    %16 = arith.addf %13, %15 : vector<19x32xf32>
    %17 = vector.extract_strided_slice %16 {offsets = [0, 0], sizes = [4, 32], strides = [1, 1]} : vector<19x32xf32> to vector<4x32xf32>
    %c0_12 = arith.constant 0 : index
    %c0_13 = arith.constant 0 : index
    %c0_14 = arith.constant 0 : index
    %c0_15 = arith.constant 0 : index
    %18 = vector.load %arg6[%c0_12, %c0_13, %c0_14, %c0_15] : memref<1x4x4x32xf32, #tpu.memory_space<vmem>>, vector<1x1x4x32xf32>
    %19 = vector.shape_cast %18 : vector<1x1x4x32xf32> to vector<4x32xf32>
    %20 = vector.shape_cast %17 : vector<4x32xf32> to vector<1x1x4x32xf32>
    tpu.vector_store %arg6[%c0_12, %c0_13, %c0_14, %c0_15], %20 {strides = array<i32>} : memref<1x4x4x32xf32, #tpu.memory_space<vmem>>, vector<1x1x4x32xf32>,
    %21 = vector.extract_strided_slice %16 {offsets = [5, 0], sizes = [4, 32], strides = [1, 1]} : vector<19x32xf32> to vector<4x32xf32>
    %c0_16 = arith.constant 0 : index
    %c1_17 = arith.constant 1 : index
    %c0_18 = arith.constant 0 : index
    %c0_19 = arith.constant 0 : index
    %22 = vector.load %arg6[%c0_16, %c1_17, %c0_18, %c0_19] : memref<1x4x4x32xf32, #tpu.memory_space<vmem>>, vector<1x1x4x32xf32>
    %23 = vector.shape_cast %22 : vector<1x1x4x32xf32> to vector<4x32xf32>
    %24 = vector.shape_cast %21 : vector<4x32xf32> to vector<1x1x4x32xf32>
    tpu.vector_store %arg6[%c0_16, %c1_17, %c0_18, %c0_19], %24 {strides = array<i32>} : memref<1x4x4x32xf32, #tpu.memory_space<vmem>>, vector<1x1x4x32xf32>,
    %25 = vector.extract_strided_slice %16 {offsets = [10, 0], sizes = [4, 32], strides = [1, 1]} : vector<19x32xf32> to vector<4x32xf32>
    %c0_20 = arith.constant 0 : index
    %c2 = arith.constant 2 : index
    %c0_21 = arith.constant 0 : index
    %c0_22 = arith.constant 0 : index
    %26 = vector.load %arg6[%c0_20, %c2, %c0_21, %c0_22] : memref<1x4x4x32xf32, #tpu.memory_space<vmem>>, vector<1x1x4x32xf32>
    %27 = vector.shape_cast %26 : vector<1x1x4x32xf32> to vector<4x32xf32>
    %28 = vector.shape_cast %25 : vector<4x32xf32> to vector<1x1x4x32xf32>
    tpu.vector_store %arg6[%c0_20, %c2, %c0_21, %c0_22], %28 {strides = array<i32>} : memref<1x4x4x32xf32, #tpu.memory_space<vmem>>, vector<1x1x4x32xf32>,
    %29 = vector.extract_strided_slice %16 {offsets = [15, 0], sizes = [4, 32], strides = [1, 1]} : vector<19x32xf32> to vector<4x32xf32>
    %c0_23 = arith.constant 0 : index
    %c3 = arith.constant 3 : index
    %c0_24 = arith.constant 0 : index
    %c0_25 = arith.constant 0 : index
    %30 = vector.load %arg6[%c0_23, %c3, %c0_24, %c0_25] : memref<1x4x4x32xf32, #tpu.memory_space<vmem>>, vector<1x1x4x32xf32>
    %31 = vector.shape_cast %30 : vector<1x1x4x32xf32> to vector<4x32xf32>
    %32 = vector.shape_cast %29 : vector<4x32xf32> to vector<1x1x4x32xf32>
    tpu.vector_store %arg6[%c0_23, %c3, %c0_24, %c0_25], %32 {strides = array<i32>} : memref<1x4x4x32xf32, #tpu.memory_space<vmem>>, vector<1x1x4x32xf32>,
    return
  }
  func.func @transform_0(%arg0: i32, %arg1: i32) -> (i32, i32, i32) {
    %c0_i32 = arith.constant 0 : i32
    %c0_i32_0 = arith.constant 0 : i32
    return %arg0, %arg1, %c0_i32 : i32, i32, i32
  }
  func.func @transform_1(%arg0: i32, %arg1: i32) -> (i32, i32, i32) {
    %c0_i32 = arith.constant 0 : i32
    %c0_i32_0 = arith.constant 0 : i32
    %c0_i32_1 = arith.constant 0 : i32
    %c0_i32_2 = arith.constant 0 : i32
    return %c0_i32, %c0_i32_0, %c0_i32_1 : i32, i32, i32
  }
  func.func @transform_2(%arg0: i32, %arg1: i32) -> (i32, i32) {
    %c0_i32 = arith.constant 0 : i32
    %c0_i32_0 = arith.constant 0 : i32
    %c0_i32_1 = arith.constant 0 : i32
    return %c0_i32, %c0_i32_0 : i32, i32
  }
  func.func @transform_3(%arg0: i32, %arg1: i32) -> (i32, i32) {
    %c0_i32 = arith.constant 0 : i32
    %c0_i32_0 = arith.constant 0 : i32
    %c0_i32_1 = arith.constant 0 : i32
    return %c0_i32, %c0_i32_0 : i32, i32
  }
  func.func @transform_4(%arg0: i32, %arg1: i32) -> (i32, i32, i32, i32) {
    %c0_i32 = arith.constant 0 : i32
    %c0_i32_0 = arith.constant 0 : i32
    %c0_i32_1 = arith.constant 0 : i32
    return %arg0, %arg1, %c0_i32, %c0_i32_0 : i32, i32, i32, i32
  }
}

</mosaic_0001>

<bundles_post_ra>
// kernel: conv_patch_embed_forward.3
= control target key start
LH: loop header
LB: loop body
LE: loop exit
PB: predicated region body
PF: predicated region fallthrough
CT: control target
= control target key end

     0   :  { %9 = vsyncpa [#allocation3], 0  ;;  %s1079_s0 = inlined_call_operand.vmem [shape: bf16[2,20,128], index: 0, kind: input, shape index: {}]   ;;  %s1080_s1 = inlined_call_operand.vmem [shape: bf16[2,128,32], index: 1, kind: input, shape index: {}]   ;;  %s1081_s2 = inlined_call_operand.vmem [shape: f32[1,32], index: 2, kind: input, shape index: {}]   ;;  %s1082_s3 = inlined_call_operand.vmem [shape: f32[1,32], index: 3, kind: input, shape index: {}]   ;;  %s1083_s4 = inlined_call_operand.hbm [shape: f32[2,4,4,32], index: 4, kind: output, shape index: {}]  }
   0x1   :  { %11 = vsyncpa [#allocation3 + $0x1], 0  ;;  %s907_s15 = smov 0   ;;  %s909_s16 = smov 0  }
   0x2   :  { %s911_s17 = smov 0   ;;  %s913_s18 = smov 0  }
   0x3   :  { %s915_s19 = smov 0   ;;  %s917_s20 = smov 0  }
   0x4 LB: > { %s611_s21 = sadd.s32 4294967295, %s877_s20   ;;  %s612_s22 = sadd.s32 4294967294, %s877_s20   ;;  %s877_s20 = sphi %s917_s20, %s17_s20   ;;  %s873_s19 = sphi %s915_s19, %s1090_s19   ;;  %s869_s18 = sphi %s913_s18, %s1089_s18   ;;  %s865_s17 = sphi %s911_s17, %s1088_s17   ;;  %s861_s16 = sphi %s909_s16, %s1087_s16   ;;  %s857_s15 = sphi %s907_s15, %s1086_s15  }
   0x5   : > { %s29_s23 = sadd.s32 1, %s873_s19  ;;  %s129_s24 = sadd.s32 1, %s865_s17 }
   0x6   : > { %p31_p0 = scmp.ge.s32.totalorder %s29_s23, 2  ;;  %p139_p1 = scmp.ne.s32.totalorder %s865_s17, %s861_s16 }
   0x7   : > { %p140_p2 = scmp.eq.s32.totalorder %s611_s21, 1  ;;  %p145_p3 = scmp.ne.s32.totalorder %s861_s16, %s857_s15 }
   0x8   : > { %s1092_s23 = smov (%p31_p0, %s29_s23), 0  ;;  %p146_p5 = scmp.eq.s32.totalorder %s612_s22, 1 }
   0x9   : > { %p947_p4 = por %p140_p2, %p139_p1  ;;  %s124_s26 = ssub.s32 %s873_s19, %s1092_s23 }
   0xa   : > { %p615_p6 = scmp.ge.s32.totalorder %s877_s20, 1  ;;  %p127_p7 = scmp.eq.s32.totalorder %s124_s26, 0 }
   0xb   : > { %p954_p8 = por %p146_p5, %p145_p3  ;;  %p186_p9 = scmp.lt.s32.totalorder %s877_s20, 3 }
   0xc   : > { %s960_s28 = scalar_select %p127_p7, %s865_s17, %s129_s24  }
   0xd   : > { %p187_p10 = pnand %p615_p6, %p186_p9 }
   0xe   : > { %p217_p11 = scmp.lt.s32.totalorder (!%p187_p10), %s869_s18, 1  ;;  %s213_s8 = sand.u32 (!%p187_p10), 1, %s861_s16  }
   0xf   : > { %190 = sbr.rel (%p187_p10) target bundleno = 280 (0x118), region = 36  ;;  %s616_s12 = sshll.u32 (!%p187_p10), %s213_s8, 4 }
  0x10   : > { %s215_s14 = scalar_lea.vmem (!%p187_p10), [#allocation2], %s616_s12  ;;  %s879_s5 = smov (!%p187_p10), [#allocation2]  }
  0x11   : > { %s532_s22 = sshll.u32 (!%p187_p10), %s215_s14, 4  ;;  %s805_s6 = sshll.u32 (!%p187_p10), %s879_s5, 4  ;;  %s1030_s22 = int_to_ptr.vmem [resolvable:$true] %s532_s22  ;;  %s806_s6 = int_to_ptr.vmem [resolvable:$false] %s805_s6 }
  0x12   : > { %s807_s7 = scalar_lea.vmem (!%p187_p10), %s806_s6, 512  ;;  %p808_p1 = scmp.lt.s32.totalorder (!%p187_p10), %s1030_s22, %s806_s6 }
  0x14   : > { %v783_v0 = vld [vmem:[%s1080_s1 + $0x38] sm:$0xff]   ;;  %v785_v2 = vld [vmem:[%s1080_s1 + $0x30] sm:$0xff]   ;;  %v787_v4 = vld [vmem:[%s1080_s1 + $0x28] sm:$0xff]   ;;  %s218_s21 = scalar_select %p217_p11, %s869_s18, 1  ;;  %vm514_vm0 = vcmask 256000   ;;  %vm469_vm1 = vcmask 1046528  }
  0x15   : > { %v784_v1 = vld [vmem:[%s1080_s1 + $0x78] sm:$0xff]   ;;  %685 = vmatprep.subr.bf16.mxu0 %v783_v0  ;;  %v786_v3 = vld [vmem:[%s1080_s1 + $0x70] sm:$0xff]   ;;  %v788_v5 = vld [vmem:[%s1080_s1 + $0x68] sm:$0xff]   ;;  %vm501_vm2 = vcmask 257024   ;;  %vm504_vm3 = vcmask 261125   ;;  %vm506_vm4 = vcmask 253952  }
  0x16   : > { %705 = vmatprep.subr.bf16.mxu1 %v784_v1  ;;  %686 = vmatpush3.bf16.msra.mxu0 %v783_v0  ;;  %v789_v6 = vld [vmem:[%s1080_s1 + $0x20] sm:$0xff]   ;;  %s725_s30 = smul.u32 12, %s218_s21  ;;  %v791_v8 = vld [vmem:[%s1080_s1 + $0x18] sm:$0xff]   ;;  %v793_v10 = vld [vmem:[%s1080_s1 + $0x10] sm:$0xff]   ;;  %s664_s21 = sshll.u32 %s869_s18, 8  ;;  %vm509_vm5 = vcmask 259074  }
  0x17   : > { %706 = vmatpush3.bf16.msra.mxu1 %v784_v1  ;;  %687 = vmatprep.subr.bf16.mxu0 %v785_v2  ;;  %v790_v7 = vld [vmem:[%s1080_s1 + $0x60] sm:$0xff]   ;;  %v792_v9 = vld [vmem:[%s1080_s1 + $0x58] sm:$0xff]   ;;  %v794_v12 = vld [vmem:[%s1080_s1 + $0x50] sm:$0xff]   ;;  %vm512_vm6 = vcmask 261127   ;;  %s1028_s29 = scalar_lea.hbm %s1083_s4, %s664_s21  ;;  %s1034_s18 = scalar_lea.sflag [#allocation3], %s213_s8 }
  0x18   : > { %707 = vmatprep.subr.bf16.mxu1 %v786_v3  ;;  %s224_s11 = scalar_lea.vmem %s1079_s0, %s725_s30  ;;  %v795_v13 = vld [vmem:[%s1080_s1 + $0x8] sm:$0xff]   ;;  %v797_v15 = vld [vmem:[%s1080_s1] sm:$0xff]   ;;  %s801_s30 = scalar_lea.vmem %s1030_s22, 256 }
  0x19   : > { %v799_v11 = vld [vmem:[%s224_s11] sm:$0xff]   ;;  %v796_v14 = vld [vmem:[%s1080_s1 + $0x48] sm:$0xff]   ;;  %p802_p12 = scmp.ne.s32.totalorder %s1030_s22, %s801_s30  ;;  %p809_p2 = scmp.lt.s32.totalorder %s807_s7, %s801_s30 }
  0x1a   : > { %688 = vmatpush3.bf16.msra.mxu0 %v785_v2  ;;  %701 = vmatprep.mubr.bf16.mxu0 %v799_v11  ;;  %v798_v16 = vld [vmem:[%s1080_s1 + $0x40] sm:$0xff]   ;;  %v800_v17 = vld [vmem:[%s224_s11 + $0x8] ss:$0 sps:$4 sm:$0x33]  }
  0x1b   : > { %708 = vmatpush3.bf16.msra.mxu1 %v786_v3  ;;  %689 = vmatprep.subr.bf16.mxu0 %v787_v4  ;;  %v652_v22 = vld [vmem:[%s1081_s2] ss:$0 sm:$0xff]  ;;  %p803_p13 = pnand %p802_p12, %p947_p4  ;;  %p810_p3 = por %p809_p2, %p808_p1 }
  0x1c   : > { %709 = vmatprep.subr.bf16.mxu1 %v788_v5  ;;  %721 = vmatprep.mubr.bf16.mxu1 %v799_v11  ;;  %v653_v26 = vld [vmem:[%s1082_s3] ss:$0 sm:$0xff] }
  0x1d   : > { %p804_p0 = pneg %p803_p13 }
  0x1e   : > { %690 = vmatpush3.bf16.msra.mxu0 %v787_v4 }
  0x1f   : > { %710 = vmatpush3.bf16.msra.mxu1 %v788_v5  ;;  %691 = vmatprep.subr.bf16.mxu0 %v789_v6  ;;  %p811_p5 = pnand %p810_p3, %p804_p0 }
  0x20   : > { %711 = vmatprep.subr.bf16.mxu1 %v790_v7 }
  0x22   : > { %692 = vmatpush3.bf16.msra.mxu0 %v789_v6 }
  0x23   : > { %712 = vmatpush3.bf16.msra.mxu1 %v790_v7  ;;  %693 = vmatprep.subr.bf16.mxu0 %v791_v8 }
  0x24   : > { %713 = vmatprep.subr.bf16.mxu1 %v792_v9 }
  0x26   : > { %694 = vmatpush3.bf16.msra.mxu0 %v791_v8 }
  0x27   : > { %714 = vmatpush3.bf16.msra.mxu1 %v792_v9  ;;  %695 = vmatprep.subr.bf16.mxu0 %v793_v10 }
  0x28   : > { %715 = vmatprep.subr.bf16.mxu1 %v794_v12 }
  0x2a   : > { %696 = vmatpush3.bf16.msra.mxu0 %v793_v10 }
  0x2b   : > { %716 = vmatpush3.bf16.msra.mxu1 %v794_v12  ;;  %697 = vmatprep.subr.bf16.mxu0 %v795_v13 }
  0x2c   : > { %717 = vmatprep.subr.bf16.mxu1 %v796_v14 }
  0x2e   : > { %698 = vmatpush3.bf16.msra.mxu0 %v795_v13 }
  0x2f   : > { %718 = vmatpush3.bf16.msra.mxu1 %v796_v14  ;;  %699 = vmatprep.subr.bf16.mxu0 %v797_v15 }
  0x30   : > { %719 = vmatprep.subr.bf16.mxu1 %v798_v16 }
  0x32   : > { %700 = vmatpush3.bf16.msra.mxu0 %v797_v15 }
  0x33   : > { %720 = vmatpush3.bf16.msra.mxu1 %v798_v16 }
  0x35   : > { %702 = vmatmul.mubr.bf16.vlgmr.msra.gmra.mxu0 %v800_v17 }
  0x36   : > { %722 = vmatmul.mubr.bf16.vlgmr.msra.gmra.mxu1 %v800_v17 }
  0xf5   : > { %v703_v18 = vpop.f32.mrf.mxu0 }
  0xf6   : > { %v723_v19 = vpop.f32.mrf.mxu1 }
  0xf7   : > { %v473_v20 = vrot.slane %v723_v19, 1  ;;  %v339_v21 = vpop.f32.mrf.mxu0 }
  0xf8   : > { %v452_v23 = vpop.f32.mrf.mxu1 }
  0xf9   : > { %v480_v24 = vadd.f32 %v703_v18, %v473_v20  ;;  %v704_v25 = vpop.f32.mrf.mxu0  ;;  %v470_v31 = vrot.slane %v452_v23, 1 }
  0xfa   : > { %v724_v27 = vpop.f32.mrf.mxu1 }
  0xfb   : > { %v490_v28 = vmul.f32 %v652_v22, %v480_v24  ;;  %v342_v33 = vpop.f32.mrf.mxu0 }
  0xfc   : > { %v455_v29 = vpop.f32.mrf.mxu1 }
  0xfd   : > { %v500_v30 = vadd.f32 %v653_v26, %v490_v28  ;;  %v471_v32 = vrot.slane %v455_v29, 1 }
  0xff   : > { %658 = vst.msk [vmem:[%s215_s14 + $0xd] sm:$0x7] %vm514_vm0, %v500_v30  ;;  %v472_v34 = vsel %vm469_vm1, %v470_v31, %v471_v32  ;;  %v474_v35 = vsel %vm469_vm1, %v471_v32, %v473_v20 }
 0x100   : > { %v478_v36 = vadd.f32 %v472_v34, %v339_v21  ;;  %v479_v37 = vadd.f32 %v474_v35, %v342_v33 }
 0x102   : > { %v488_v38 = vmul.f32 %v652_v22, %v478_v36  ;;  %v489_v39 = vmul.f32 %v652_v22, %v479_v37 }
 0x104   : > { %v498_v40 = vadd.f32 %v653_v26, %v488_v38  ;;  %v499_v41 = vadd.f32 %v653_v26, %v489_v39 }
 0x106   : > { %502 = vst.msk [vmem:[%s215_s14] sm:$0xf] %vm501_vm2, %v498_v40 }
 0x107   : > { %654 = vst.msk [vmem:[%s215_s14 - $0x1] sm:$0xe0] %vm504_vm3, %v498_v40 }
 0x108   : > { %655 = vst.msk [vmem:[%s215_s14 + $0x7] sm:$0x1] %vm506_vm4, %v499_v41 }
 0x109   : > { %656 = vst.msk [vmem:[%s215_s14 + $0x6] sm:$0x3c] %vm509_vm5, %v499_v41 }
 0x10a   : > { %657 = vst.msk [vmem:[%s215_s14 + $0x5] sm:$0x80] %vm512_vm6, %v499_v41 }
 0x10b   : > { %814 = shalt.err (!%p811_p5)
}
 0x10c   : > { %s815_s8 = scalar_lea.hbm %s1028_s29, 256  ;;  %s819_s12 = scalar_lea.hbm %s1083_s4, 512 }
 0x10d   : > { %p816_p6 = scmp.ne.s32.totalorder %s1028_s29, %s815_s8  ;;  %p820_p10 = scmp.lt.s32.totalorder %s1028_s29, %s1083_s4 }
 0x10e   : > { %p821_p11 = scmp.lt.s32.totalorder %s819_s12, %s815_s8 }
 0x10f   : > { %p817_p7 = pnand %p816_p6, %p947_p4 }
 0x110   : > { %p822_p12 = por %p821_p11, %p820_p10 }
 0x111   : > { %p818_p9 = pneg %p817_p7 }
 0x113   : > { %p823_p13 = pnand %p822_p12, %p818_p9 }
 0x115   : > { %826 = shalt.err (!%p823_p13)
}
 0x116   : > { %s880_s14 = smov 64   ;;  %s881_s21 = smov 4  }
 0x117   : > { %726 = dma.vmem_to_hbm [thread:$0]  (%p947_p4), %s1030_s22, 256, %s1028_s29, %s1034_s18, %s880_s14, %s880_s14, %s881_s21  }
 0x118 PF: > { %p732_p0 = scmp.ge.s32.totalorder %s877_s20, 2  ;;  %s547_s24 = sand.u32 1, %s857_s15  }
 0x119   : > { %s548_s26 = scalar_lea.sflag [#allocation3], %s547_s24 }
 0x11a   : > { %p729_p1 = pnand %p732_p0, %p954_p8 }
 0x11c   : > { %p730_p2 = pneg %p729_p1 }
 0x11e   : > { %852 = dma.done.wait (%p730_p2), %s548_s26, 256  }
 0x11f   : > { %854 = vsyncadd (%p730_p2), %s548_s26, 4294967040  ;;  %s17_s20 = sadd.s32 1, %s877_s20   ;;  %s1086_s15 = smov %s861_s16 }
 0x120   : > { %p14_p3 = scmp.ge.s32.totalorder %s17_s20, 4   ;;  %s1087_s16 = smov %s865_s17 }
 0x121   : > { %s1088_s17 = smov %s960_s28  ;;  %s1089_s18 = smov %s873_s19 }
 0x122   : > { %s1090_s19 = smov %s1092_s23  ;;  %16 = sbr.rel (!%p14_p3) target bundleno = 4 (0x4), region = 75 }
 0x127   :  { %553 = vsyncpa [#allocation3], 1 }
 0x128   :  { %555 = vsyncpa [#allocation3 + $0x1], 1 }

// kernel: conv_patch_embed_forward.2
= control target key start
LH: loop header
LB: loop body
LE: loop exit
PB: predicated region body
PF: predicated region fallthrough
CT: control target
= control target key end

     0   :  { %s1083_s15 = smov 0   ;;  %s1085_s16 = smov 0   ;;  %s1283_s0 = inlined_call_operand.vmem [shape: bf16[2,72,32], index: 0, kind: input, shape index: {}]   ;;  %s1284_s1 = inlined_call_operand.vmem [shape: bf16[2,32,16], index: 1, kind: input, shape index: {}]   ;;  %s1285_s2 = inlined_call_operand.vmem [shape: f32[1,16], index: 2, kind: input, shape index: {}]   ;;  %s1286_s3 = inlined_call_operand.vmem [shape: f32[1,16], index: 3, kind: input, shape index: {}]   ;;  %s1287_s4 = inlined_call_operand.vmem [shape: bf16[2,8,8,16], index: 4, kind: output, shape index: {}]  }
   0x1   :  { %s1087_s17 = smov 0  }
   0x2 LB: > { %s26_s18 = sadd.s32 1, %s1050_s16  ;;  %p857_p0 = scmp.ge.s32.totalorder %s1054_s17, 1  ;;  %s1054_s17 = sphi %s1087_s17, %s14_s17   ;;  %s1050_s16 = sphi %s1085_s16, %s1293_s16   ;;  %s1046_s15 = sphi %s1083_s15, %s1292_s15  }
   0x3   : > { %p28_p1 = scmp.ge.s32.totalorder %s26_s18, 2  ;;  %p183_p2 = scmp.lt.s32.totalorder %s1054_s17, 3 }
   0x5   : > { %s1295_s18 = smov (%p28_p1, %s26_s18), 0  ;;  %p184_p3 = pnand %p857_p0, %p183_p2 }
   0x6   : > { %p218_p4 = scmp.lt.s32.totalorder (!%p184_p3), %s1046_s15, 1 }
   0x7   : > { %187 = sbr.rel (%p184_p3) target bundleno = 293 (0x125), region = 36 }
   0xc   : > { %v1005_v0 = vld [vmem:[%s1284_s1 + $0x8] sm:$0xff]   ;;  %v1056_v1 = vmov 0.0   ;;  %v1006_v2 = vld [vmem:[%s1284_s1 + $0x18] sm:$0xff]   ;;  %v1007_v3 = vld [vmem:[%s1284_s1] sm:$0xff]   ;;  %vm1057_vm0 = vmmov 0   ;;  %s1297_s15 = smov (!%p218_p4, %s1046_s15), 1 }
   0xd   : > { %930 = vmatprep.subr.bf16.mxu0 %v1056_v1  ;;  %954 = vmatprep.subr.bf16.mxu1 %v1056_v1  ;;  %v1008_v4 = vld [vmem:[%s1284_s1 + $0x10] sm:$0xff]   ;;  %s978_s27 = smul.u32 36, %s1297_s15  ;;  %vm286_vm1 = vcmask 261120   ;;  %vm472_vm2 = vcmask 1046528   ;;  %v1143_v21 = vld [vmem:[%s1285_s2] ss:$0 sm:$0xff] }
   0xe   : > { %931 = vmatpush3.bf16.msra.mxu0 %v1005_v0  ;;  %934 = vmatprep.mubr.msk.bf16.mxu0 %vm1057_vm0, %v1056_v1  ;;  %v1148_v25 = vld [vmem:[%s1286_s3] ss:$0 sm:$0xff]  ;;  %s907_s9 = sshll.u32 %s1297_s15, 5  ;;  %vm626_vm3 = vcmask 125952   ;;  %vm634_vm4 = vsmask.f32 3328 }
   0xf   : > { %955 = vmatpush3.bf16.msra.mxu1 %v1006_v2  ;;  %932 = vmatprep.subr.bf16.mxu0 %v1056_v1  ;;  %s225_s30 = scalar_lea.vmem %s1283_s0, %s978_s27  ;;  %s1229_s12 = scalar_lea.vmem %s1287_s4, %s907_s9  ;;  %vm635_vm5 = vsmask.f32 7440  ;;  %vm656_vm7 = vcmask 1042432   ;;  %vm657_vm8 = vcmask 1046532   ;;  %vm669_vm10 = vsmask.f32 2304 }
  0x10   : > { %956 = vmatprep.subr.bf16.mxu1 %v1056_v1  ;;  %958 = vmatprep.mubr.msk.bf16.mxu1 %vm1057_vm0, %v1056_v1  ;;  %v1009_v5 = vld [vmem:[%s225_s30] sm:$0xff]   ;;  %v1010_v6 = vld [vmem:[%s225_s30 + $0x8] sm:$0xff]   ;;  %v1011_v7 = vld [vmem:[%s225_s30 + $0x10] sm:$0xff]   ;;  %vm670_vm11 = vsmask.f32 6416  ;;  %vm695_vm12 = vcmask 1041408  }
  0x11   : > { %v1012_v8 = vld [vmem:[%s225_s30 + $0x18] sm:$0xff]   ;;  %v1013_v9 = vld [vmem:[%s225_s30 + $0x20] ss:$0 sps:$4 sm:$0xff]   ;;  %vm1242_vm6 = vmor %vm634_vm4, %vm635_vm5  ;;  %vm696_vm13 = vcmask 1045508   ;;  %vm735_vm4 = vcmask 1044484  }
  0x12   : > { %933 = vmatpush3.bf16.msra.mxu0 %v1007_v3  ;;  %vm658_vm9 = vmor %vm656_vm7, %vm657_vm8  ;;  %vm747_vm7 = vsmask.f32 256  ;;  %vm748_vm8 = vsmask.f32 4368 }
  0x13   : > { %957 = vmatpush3.bf16.msra.mxu1 %v1008_v4  ;;  %vm1255_vm14 = vmor %vm669_vm10, %vm670_vm11 }
  0x14   : > { %vm697_vm15 = vmor %vm695_vm12, %vm696_vm13 }
  0x15   : > { %935 = vmatmul.mubr.msk.bf16.vlgmr.msra.gmra.mxu0 %vm286_vm1, %v1009_v5 }
  0x16   : > { %959 = vmatmul.mubr.msk.bf16.vlgmr.msra.gmra.mxu1 %vm286_vm1, %v1009_v5  ;;  %938 = vmatprep.mubr.msk.bf16.mxu0 %vm1057_vm0, %v1056_v1 }
  0x17   : > { %962 = vmatprep.mubr.msk.bf16.mxu1 %vm1057_vm0, %v1056_v1 }
  0x1d   : > { %939 = vmatmul.mubr.msk.bf16.gmra.mxu0 %vm286_vm1, %v1010_v6 }
  0x1e   : > { %963 = vmatmul.mubr.msk.bf16.gmra.mxu1 %vm286_vm1, %v1010_v6  ;;  %942 = vmatprep.mubr.msk.bf16.mxu0 %vm1057_vm0, %v1056_v1 }
  0x1f   : > { %966 = vmatprep.mubr.msk.bf16.mxu1 %vm1057_vm0, %v1056_v1 }
  0x25   : > { %943 = vmatmul.mubr.msk.bf16.gmra.mxu0 %vm286_vm1, %v1011_v7 }
  0x26   : > { %967 = vmatmul.mubr.msk.bf16.gmra.mxu1 %vm286_vm1, %v1011_v7  ;;  %946 = vmatprep.mubr.msk.bf16.mxu0 %vm1057_vm0, %v1056_v1 }
  0x27   : > { %970 = vmatprep.mubr.msk.bf16.mxu1 %vm1057_vm0, %v1056_v1 }
  0x2d   : > { %947 = vmatmul.mubr.msk.bf16.gmra.mxu0 %vm286_vm1, %v1012_v8 }
  0x2e   : > { %971 = vmatmul.mubr.msk.bf16.gmra.mxu1 %vm286_vm1, %v1012_v8  ;;  %950 = vmatprep.mubr.msk.bf16.mxu0 %vm1057_vm0, %v1056_v1 }
  0x2f   : > { %974 = vmatprep.mubr.msk.bf16.mxu1 %vm1057_vm0, %v1056_v1  ;;  %vm708_vm0 = vsmask.f32 1280 }
  0x35   : > { %951 = vmatmul.mubr.msk.bf16.gmra.mxu0 %vm286_vm1, %v1013_v9 }
  0x36   : > { %975 = vmatmul.mubr.msk.bf16.gmra.mxu1 %vm286_vm1, %v1013_v9  ;;  %vm709_vm1 = vsmask.f32 5392 }
  0x37   : > { %vm710_vm5 = vmor %vm708_vm0, %vm709_vm1 }
  0xd5   : > { %v336_v10 = vpop.f32.mrf.mxu0 }
  0xd6   : > { %v425_v11 = vpop.f32.mrf.mxu1 }
  0xd7   : > { %v936_v12 = vpop.f32.mrf.mxu0  ;;  %v473_v16 = vrot.slane %v425_v11, 1 }
  0xd8   : > { %v960_v13 = vpop.f32.mrf.mxu1 }
  0xd9   : > { %v339_v14 = vpop.f32.mrf.mxu0 }
  0xda   : > { %v428_v15 = vpop.f32.mrf.mxu1 }
  0xdb   : > { %v474_v17 = vrot.slane %v428_v15, 1  ;;  %v937_v18 = vpop.f32.mrf.mxu0 }
  0xdc   : > { %v961_v19 = vpop.f32.mrf.mxu1 }
  0xdd   : > { %v475_v20 = vsel %vm472_vm2, %v473_v16, %v474_v17  ;;  %v344_v23 = vpop.f32.mrf.mxu0 }
  0xde   : > { %v499_v22 = vadd.f32 %v475_v20, %v336_v10  ;;  %v433_v24 = vpop.f32.mrf.mxu1 }
  0xdf   : > { %v476_v26 = vrot.slane %v433_v24, 1  ;;  %v940_v28 = vpop.f32.mrf.mxu0 }
  0xe0   : > { %v515_v27 = vmul.f32 %v1143_v21, %v499_v22  ;;  %v964_v29 = vpop.f32.mrf.mxu1 }
  0xe1   : > { %v477_v30 = vsel %vm472_vm2, %v474_v17, %v476_v26  ;;  %v347_v33 = vpop.f32.mrf.mxu0 }
  0xe2   : > { %v1153_v31 = vadd.f32 %v1148_v25, %v515_v27  ;;  %v500_v32 = vadd.f32 %v477_v30, %v339_v14  ;;  %v436_v34 = vpop.f32.mrf.mxu1 }
  0xe3   : > { %v478_v35 = vrot.slane %v436_v34, 1  ;;  %v941_v38 = vpop.f32.mrf.mxu0 }
  0xe4   : > { %v549_v36 = vmul.f32 0.044715, %v1153_v31  ;;  %v516_v37 = vmul.f32 %v1143_v21, %v500_v32  ;;  %v965_v39 = vpop.f32.mrf.mxu1 }
  0xe5   : > { %v479_v40 = vsel %vm472_vm2, %v476_v26, %v478_v35  ;;  %v352_v44 = vpop.f32.mrf.mxu0 }
  0xe6   : > { %v558_v41 = vmul.f32 %v549_v36, %v1153_v31  ;;  %v1160_v42 = vadd.f32 %v1148_v25, %v516_v37  ;;  %v501_v43 = vadd.f32 %v479_v40, %v344_v23  ;;  %v441_v45 = vpop.f32.mrf.mxu1 }
  0xe7   : > { %v480_v46 = vrot.slane %v441_v45, 1  ;;  %v944_v50 = vpop.f32.mrf.mxu0 }
  0xe8   : > { %v567_v47 = vmul.f32 %v558_v41, %v1153_v31  ;;  %v550_v48 = vmul.f32 0.044715, %v1160_v42  ;;  %v517_v49 = vmul.f32 %v1143_v21, %v501_v43  ;;  %v968_v51 = vpop.f32.mrf.mxu1 }
  0xe9   : > { %v481_v52 = vsel %vm472_vm2, %v478_v35, %v480_v46  ;;  %v355_v57 = vpop.f32.mrf.mxu0 }
  0xea   : > { %v576_v53 = vadd.f32 %v567_v47, %v1153_v31  ;;  %v559_v54 = vmul.f32 %v550_v48, %v1160_v42  ;;  %v1169_v55 = vadd.f32 %v1148_v25, %v517_v49  ;;  %v502_v56 = vadd.f32 %v481_v52, %v347_v33  ;;  %v444_v58 = vpop.f32.mrf.mxu1 }
  0xeb   : > { %v482_v59 = vrot.slane %v444_v58, 1  ;;  %v945_v63 = vpop.f32.mrf.mxu0 }
  0xec   : > { %v585_v60 = vmul.f32 0.7978846, %v576_v53  ;;  %v568_v61 = vmul.f32 %v559_v54, %v1160_v42  ;;  %v551_v62 = vmul.f32 0.044715, %v1169_v55  ;;  %v969_v0 = vpop.f32.mrf.mxu1  ;;  %v518_v1 = vmul.f32 %v1143_v21, %v502_v56 }
  0xed   : > { %v483_v2 = vsel %vm472_vm2, %v480_v46, %v482_v59  ;;  %v360_v6 = vpop.f32.mrf.mxu0 }
  0xee   : > { %1014 = vtanh.f32 %v585_v60  ;;  %v577_v3 = vadd.f32 %v568_v61, %v1160_v42  ;;  %v560_v4 = vmul.f32 %v551_v62, %v1169_v55  ;;  %v503_v5 = vadd.f32 %v483_v2, %v352_v44  ;;  %v449_v7 = vpop.f32.mrf.mxu1 }
  0xef   : > { %v1178_v8 = vadd.f32 %v1148_v25, %v518_v1  ;;  %v484_v9 = vrot.slane %v449_v7, 1  ;;  %v948_v13 = vpop.f32.mrf.mxu0 }
  0xf0   : > { %v586_v10 = vmul.f32 0.7978846, %v577_v3  ;;  %v569_v11 = vmul.f32 %v560_v4, %v1169_v55  ;;  %v519_v12 = vmul.f32 %v1143_v21, %v503_v5  ;;  %v972_v14 = vpop.f32.mrf.mxu1 }
  0xf1   : > { %v552_v15 = vmul.f32 0.044715, %v1178_v8  ;;  %v485_v16 = vsel %vm472_vm2, %v482_v59, %v484_v9  ;;  %v363_v20 = vpop.f32.mrf.mxu0 }
  0xf2   : > { %1016 = vtanh.f32 %v586_v10  ;;  %v578_v17 = vadd.f32 %v569_v11, %v1169_v55  ;;  %v1186_v18 = vadd.f32 %v1148_v25, %v519_v12  ;;  %v504_v19 = vadd.f32 %v485_v16, %v355_v57  ;;  %v452_v22 = vpop.f32.mrf.mxu1 }
  0xf3   : > { %v561_v23 = vmul.f32 %v552_v15, %v1178_v8  ;;  %v486_v24 = vrot.slane %v452_v22, 1  ;;  %v949_v29 = vpop.f32.mrf.mxu0  ;;  %v542_v22 = vmul.f32 0.5, %v1169_v55 }
  0xf4   : > { %v587_v26 = vmul.f32 0.7978846, %v578_v17  ;;  %v553_v27 = vmul.f32 0.044715, %v1186_v18  ;;  %v520_v28 = vmul.f32 %v1143_v21, %v504_v19  ;;  %v973_v30 = vpop.f32.mrf.mxu1 }
  0xf5   : > { %v570_v32 = vmul.f32 %v561_v23, %v1178_v8  ;;  %v487_v33 = vsel %vm472_vm2, %v484_v9, %v486_v24  ;;  %v368_v37 = vpop.f32.mrf.mxu0  ;;  %v540_v9 = vmul.f32 0.5, %v1153_v31 }
  0xf6   : > { %1018 = vtanh.f32 %v587_v26  ;;  %v562_v34 = vmul.f32 %v553_v27, %v1186_v18  ;;  %v1195_v35 = vadd.f32 %v1148_v25, %v520_v28  ;;  %v505_v36 = vadd.f32 %v487_v33, %v360_v6  ;;  %v457_v38 = vpop.f32.mrf.mxu1 }
  0xf7   : > { %v579_v39 = vadd.f32 %v570_v32, %v1178_v8  ;;  %v488_v40 = vrot.slane %v457_v38, 1  ;;  %v952_v45 = vpop.f32.mrf.mxu0  ;;  %v543_v38 = vmul.f32 0.5, %v1178_v8  ;;  %v544_v8 = vmul.f32 0.5, %v1186_v18 }
  0xf8   : > { %v571_v41 = vmul.f32 %v562_v34, %v1186_v18  ;;  %v554_v43 = vmul.f32 0.044715, %v1195_v35  ;;  %v521_v44 = vmul.f32 %v1143_v21, %v505_v36  ;;  %v976_v46 = vpop.f32.mrf.mxu1 }
  0xf9   : > { %v588_v47 = vmul.f32 0.7978846, %v579_v39  ;;  %v489_v48 = vsel %vm472_vm2, %v486_v24, %v488_v40  ;;  %v507_v49 = vadd.f32 %v488_v40, %v368_v37  ;;  %v371_v54 = vpop.f32.mrf.mxu0  ;;  %vm734_vm2 = vcmask 1040384  }
  0xfa   : > { %v580_v50 = vadd.f32 %v571_v41, %v1186_v18  ;;  %v563_v51 = vmul.f32 %v554_v43, %v1195_v35  ;;  %v1205_v52 = vadd.f32 %v1148_v25, %v521_v44  ;;  %v506_v53 = vadd.f32 %v489_v48, %v363_v20  ;;  %v460_v56 = vpop.f32.mrf.mxu1 }
  0xfb   : > { %v1015_v57 = vpop.eup %1014  ;;  %1020 = vtanh.f32 %v588_v47  ;;  %v523_v58 = vmul.f32 %v1143_v21, %v507_v49  ;;  %v953_v61 = vpop.f32.mrf.mxu0  ;;  %v545_v18 = vmul.f32 0.5, %v1195_v35 }
  0xfc   : > { %v589_v59 = vmul.f32 0.7978846, %v580_v50  ;;  %v572_v60 = vmul.f32 %v563_v51, %v1195_v35  ;;  %v977_v62 = vpop.f32.mrf.mxu1  ;;  %v555_v63 = vmul.f32 0.044715, %v1205_v52  ;;  %v522_v0 = vmul.f32 %v1143_v21, %v506_v53 }
  0xfd   : > { %v1212_v1 = vadd.f32 %v1148_v25, %v523_v58  ;;  %v603_v2 = vadd.f32 1.0, %v1015_v57  ;;  %v541_v21 = vmul.f32 0.5, %v1160_v42 }
  0xfe   : > { %1022 = vtanh.f32 %v589_v59  ;;  %v581_v3 = vadd.f32 %v572_v60, %v1195_v35  ;;  %v564_v5 = vmul.f32 %v555_v63, %v1205_v52  ;;  %v1217_v6 = vadd.f32 %v1148_v25, %v522_v0 }
  0xff   : > { %v1017_v4 = vpop.eup %1016  ;;  %v557_v7 = vmul.f32 0.044715, %v1212_v1  ;;  %v612_v15 = vmul.f32 %v603_v2, %v540_v9 }
 0x100   : > { %v604_v10 = vadd.f32 1.0, %v1017_v4  ;;  %v590_v11 = vmul.f32 0.7978846, %v581_v3  ;;  %v573_v12 = vmul.f32 %v564_v5, %v1205_v52  ;;  %v556_v13 = vmul.f32 0.044715, %v1217_v6 }
 0x101   : > { %v566_v14 = vmul.f32 %v557_v7, %v1212_v1 }
 0x102   : > { %v613_v16 = vmul.f32 %v604_v10, %v541_v21  ;;  %1024 = vtanh.f32 %v590_v11  ;;  %v582_v31 = vadd.f32 %v573_v12, %v1205_v52  ;;  %v565_v42 = vmul.f32 %v556_v13, %v1217_v6 }
 0x103   : > { %v1019_v25 = vpop.eup %1018  ;;  %v575_v17 = vmul.f32 %v566_v14, %v1212_v1  ;;  %v546_v13 = vmul.f32 0.5, %v1205_v52 }
 0x104   : > { %v621_v19 = vpack.c.bf16 %v613_v16, %v612_v15  ;;  %v908_v20 = vpack.c.bf16 %v613_v16, %v613_v16  ;;  %v605_v23 = vadd.f32 1.0, %v1019_v25  ;;  %v591_v24 = vmul.f32 0.7978846, %v582_v31 }
 0x105   : > { %v574_v26 = vmul.f32 %v565_v42, %v1217_v6  ;;  %v584_v27 = vadd.f32 %v575_v17, %v1212_v1 }
 0x106   : > { %627 = vst.msk [vmem:[%s1229_s12] sm:$0xf] %vm626_vm3, %v621_v19  ;;  %v638_v28 = vshrl.u32 %v908_v20, 16  ;;  %v641_v29 = vshll.u32 %v908_v20, 16  ;;  %v614_v30 = vmul.f32 %v605_v23, %v542_v22  ;;  %1026 = vtanh.f32 %v591_v24 }
 0x107   : > { %v583_v32 = vadd.f32 %v574_v26, %v1217_v6  ;;  %v593_v33 = vmul.f32 0.7978846, %v584_v27  ;;  %v548_v19 = vmul.f32 0.5, %v1212_v1 }
 0x108   : > { %v1021_v34 = vpop.eup %1020  ;;  %v640_v36 = vrot.slane %v638_v28, 4  ;;  %v643_v37 = vrot.slane %v641_v29, 5  ;;  %v909_v55 = vpack.c.bf16 %v614_v30, %v614_v30  ;;  %v547_v28 = vmul.f32 0.5, %v1217_v6 }
 0x109   : > { %v606_v39 = vadd.f32 1.0, %v1021_v34  ;;  %v592_v40 = vmul.f32 0.7978846, %v583_v32  ;;  %1028 = vtanh.f32 %v593_v33 }
 0x10a   : > { %v644_v41 = vor.u32 %v643_v37, %v640_v36  ;;  %v647_v43 = vshll.u32 %v909_v55, 16  ;;  %v890_v56 = vrot.slane %v909_v55, 9 }
 0x10b   : > { %v1023_v44 = vpop.eup %1022  ;;  %v615_v46 = vmul.f32 %v606_v39, %v543_v38  ;;  %1030 = vtanh.f32 %v592_v40 }
 0x10c   : > { %v645_v47 = vrot.slane %v644_v41, 4  ;;  %v649_v48 = vrot.slane %v647_v43, 5  ;;  %v607_v49 = vadd.f32 1.0, %v1023_v44 }
 0x10d   : > { %v910_v50 = vpack.c.bf16 %v615_v46, %v615_v46 }
 0x10e   : > { %v650_v51 = vsel %vm1242_vm6, %v645_v47, %v649_v48  ;;  %v616_v53 = vmul.f32 %v607_v49, %v544_v8  ;;  %vm736_vm6 = vmor %vm734_vm2, %vm735_vm4 }
 0x10f   : > { %v1025_v54 = vpop.eup %1024  ;;  %888 = vst.msk [vmem:[%s1229_s12 + $0x4] sm:$0xf] %vm626_vm3, %v650_v51  ;;  %v661_v57 = vrot.slane %v910_v50, 5  ;;  %v673_v58 = vshrl.u32 %v910_v50, 16  ;;  %v676_v59 = vshll.u32 %v910_v50, 16 }
 0x110   : > { %v911_v60 = vpack.c.bf16 %v616_v53, %v616_v53  ;;  %v608_v61 = vadd.f32 1.0, %v1025_v54 }
 0x111   : > { %v662_v62 = vsel %vm658_vm9, %v890_v56, %v661_v57  ;;  %v675_v63 = vrot.slane %v673_v58, 5  ;;  %v678_v0 = vrot.slane %v676_v59, 6  ;;  %vm749_vm9 = vmor %vm747_vm7, %vm748_vm8 }
 0x112   : > { %891 = vst.msk [vmem:[%s1229_s12 + $0x8] sm:$0xf] %vm626_vm3, %v662_v62  ;;  %v682_v2 = vshrl.u32 %v911_v60, 16  ;;  %v685_v3 = vshll.u32 %v911_v60, 16  ;;  %v617_v4 = vmul.f32 %v608_v61, %v545_v18  ;;  %v895_v12 = vrot.slane %v911_v60, 10 }
 0x113   : > { %v679_v5 = vor.u32 %v678_v0, %v675_v63  ;;  %v1027_v7 = vpop.eup %1026 }
 0x114   : > { %v684_v21 = vrot.slane %v682_v2, 5  ;;  %v687_v35 = vrot.slane %v685_v3, 6  ;;  %v912_v10 = vpack.c.bf16 %v617_v4, %v617_v4  ;;  %v609_v14 = vadd.f32 1.0, %v1027_v7 }
 0x115   : > { %v680_v11 = vrot.slane %v679_v5, 4 }
 0x116   : > { %v1029_v15 = vpop.eup %1028  ;;  %v688_v16 = vor.u32 %v687_v35, %v684_v21  ;;  %v700_v25 = vrot.slane %v912_v10, 6  ;;  %v712_v31 = vshrl.u32 %v912_v10, 16  ;;  %v715_v42 = vshll.u32 %v912_v10, 16 }
 0x117   : > { %v618_v17 = vmul.f32 %v609_v14, %v546_v13  ;;  %v611_v20 = vadd.f32 1.0, %v1029_v15 }
 0x118   : > { %v1031_v22 = vpop.eup %1030  ;;  %v689_v23 = vsel %vm1255_vm14, %v680_v11, %v688_v16  ;;  %v701_v24 = vsel %vm697_vm15, %v895_v12, %v700_v25  ;;  %v714_v26 = vrot.slane %v712_v31, 6  ;;  %v717_v27 = vrot.slane %v715_v42, 7 }
 0x119   : > { %893 = vst.msk [vmem:[%s1229_s12 + $0xc] sm:$0xf] %vm626_vm3, %v689_v23  ;;  %896 = vst.msk [vmem:[%s1229_s12 + $0x10] sm:$0xf] %vm626_vm3, %v701_v24  ;;  %v913_v52 = vpack.c.bf16 %v618_v17, %v618_v17  ;;  %v610_v29 = vadd.f32 1.0, %v1031_v22  ;;  %v620_v30 = vmul.f32 %v611_v20, %v548_v19 }
 0x11a   : > { %v718_v1 = vor.u32 %v717_v27, %v714_v26 }
 0x11b   : > { %v721_v32 = vshrl.u32 %v913_v52, 16  ;;  %v724_v33 = vshll.u32 %v913_v52, 16  ;;  %v619_v34 = vmul.f32 %v610_v29, %v547_v28  ;;  %v915_v36 = vpack.c.bf16 %v620_v30, %v620_v30 }
 0x11c   : > { %v900_v39 = vrot.slane %v913_v52, 11  ;;  %v719_v40 = vrot.slane %v718_v1, 4 }
 0x11d   : > { %v723_v37 = vrot.slane %v721_v32, 6  ;;  %v726_v55 = vrot.slane %v724_v33, 7  ;;  %v914_v38 = vpack.c.bf16 %v619_v34, %v619_v34  ;;  %v756_v6 = vshrl.u32 %v915_v36, 16 }
 0x11e   : > { %v759_v46 = vshll.u32 %v915_v36, 16 }
 0x11f   : > { %v727_v41 = vor.u32 %v726_v55, %v723_v37  ;;  %v739_v43 = vrot.slane %v914_v38, 7  ;;  %v751_v44 = vshrl.u32 %v914_v38, 16  ;;  %v758_v45 = vrot.slane %v756_v6, 7 }
 0x121   : > { %v728_v47 = vsel %vm710_vm5, %v719_v40, %v727_v41  ;;  %v740_v48 = vsel %vm736_vm6, %v900_v39, %v739_v43  ;;  %v903_v8 = vrot.slane %v751_v44, 11  ;;  %v761_v49 = vor.u32 %v759_v46, %v758_v45 }
 0x122   : > { %898 = vst.msk [vmem:[%s1229_s12 + $0x14] sm:$0xf] %vm626_vm3, %v728_v47  ;;  %901 = vst.msk [vmem:[%s1229_s12 + $0x18] sm:$0xf] %vm626_vm3, %v740_v48 }
 0x123   : > { %v762_v50 = vsel %vm749_vm9, %v903_v8, %v761_v49 }
 0x124   : > { %904 = vst.msk [vmem:[%s1229_s12 + $0x1c] sm:$0xf] %vm626_vm3, %v762_v50 }
 0x125 PF: > { %s14_s17 = sadd.s32 1, %s1054_s17   ;;  %s1292_s15 = smov %s1050_s16 }
 0x126   : > { %p11_p5 = scmp.ge.s32.totalorder %s14_s17, 4   ;;  %s1293_s16 = smov %s1295_s18 }
 0x128   :  { %13 = sbr.rel (!%p11_p5) target bundleno = 2 (0x2), region = 74 }

</bundles_post_ra>
